<compile_context>
chip_gen: v7x
topology: tpu7x:2x2x1
jax: 0.10.0
libtpu: 0.0.40
codegen_flags: <defaults>
</compile_context>

<pallas_src>
import math
from functools import partial

import jax
import jax.numpy as jnp
from jax import lax
from jax.experimental import pallas as pl
from jax.experimental.pallas import tpu as pltpu


# Safe on every generation: v5e raises its 16 MiB default, v6e default, v7x
# keeps headroom under its 64 MiB physical VMEM.
_VMEM_LIMIT = 32 * 1024 * 1024


def _pick_tile(dim, preferred):
    """Largest MXU-friendly tile that divides `dim`, else the full dim."""
    for t in preferred:
        if dim % t == 0:
            return t
    return dim


def _gelu_tanh(x):
    # nn.GELU(approximate='tanh'), computed in f32.
    c = math.sqrt(2.0 / math.pi)
    return 0.5 * x * (1.0 + jnp.tanh(c * (x + 0.044715 * x * x * x)))


# ----------------------------------------------------------------------------
# Pallas kernels
# ----------------------------------------------------------------------------

def ln_linear_kernel(x_ref, g_ref, b_ref, w_ref, bias_ref, o_ref,
                     *, compute_dtype, gelu):
    """out = [gelu]( LN(x) @ W + bias ).  x block is full-K so LN is local."""
    x = x_ref[...]                                        # (tm, K) f32
    mean = jnp.mean(x, axis=-1, keepdims=True)
    var = jnp.mean((x - mean) ** 2, axis=-1, keepdims=True)
    xn = (x - mean) * lax.rsqrt(var + 1e-5) * g_ref[...] + b_ref[...]
    h = jnp.dot(xn.astype(compute_dtype),
                w_ref[...].astype(compute_dtype),
                preferred_element_type=jnp.float32) + bias_ref[...]
    if gelu:
        h = _gelu_tanh(h)                                 # f32 VPU math
    o_ref[...] = h


def linear_residual_kernel(x_ref, w_ref, bias_ref, res_ref, o_ref,
                           *, compute_dtype):
    """out = res + x @ W + bias  (residual add fused into the store)."""
    h = jnp.dot(x_ref[...].astype(compute_dtype),
                w_ref[...].astype(compute_dtype),
                preferred_element_type=jnp.float32) + bias_ref[...]
    o_ref[...] = res_ref[...] + h


def ln_lm_head_kernel(x_ref, g_ref, b_ref, wte_ref, o_ref, *, compute_dtype):
    """logits = LN(x) @ wte.T without materializing wte.T (contract on C)."""
    x = x_ref[...]                                        # (tm, C) f32
    mean = jnp.mean(x, axis=-1, keepdims=True)
    var = jnp.mean((x - mean) ** 2, axis=-1, keepdims=True)
    xn = (x - mean) * lax.rsqrt(var + 1e-5) * g_ref[...] + b_ref[...]
    o_ref[...] = lax.dot_general(
        xn.astype(compute_dtype), wte_ref[...].astype(compute_dtype),
        (((1,), (1,)), ((), ())),                         # contract C with C
        preferred_element_type=jnp.float32)


def attention_kernel(qkv_ref, o_ref, *, n_head, compute_dtype):
    """Causal attention for one batch element, all heads per grid step.

    Reads the fused qkv row block (T, 3C) and writes the already-merged
    (T, C) output, so no head split/merge transposes are needed in JAX.
    """
    qkv = qkv_ref[...]                                    # (T, 3C) f32
    T = qkv.shape[0]
    C = qkv.shape[1] // 3
    D = C // n_head
    scale = 1.0 / math.sqrt(D)

    row = lax.broadcasted_iota(jnp.int32, (T, T), 0)
    col = lax.broadcasted_iota(jnp.int32, (T, T), 1)
    causal = col <= row

    exact = compute_dtype == jnp.float32
    outs = []
    # TODO(synk): for large T switch to a flash-style KV-block loop with
    # online softmax instead of the dense (T, T) score matrix.
    for h in range(n_head):                               # static unroll
        q = qkv[:, h * D:(h + 1) * D].astype(compute_dtype)
        k = qkv[:, C + h * D: C + (h + 1) * D].astype(compute_dtype)
        v = qkv[:, 2 * C + h * D: 2 * C + (h + 1) * D].astype(compute_dtype)
        # q @ k^T without an explicit transpose: contract on D.
        s = lax.dot_general(q, k, (((1,), (1,)), ((), ())),
                            preferred_element_type=jnp.float32) * scale
        s = jnp.where(causal, s, -1e30)                   # mask in f32
        m = jnp.max(s, axis=-1, keepdims=True)
        p = jnp.exp(s - m)                                # softmax in f32
        l = jnp.sum(p, axis=-1, keepdims=True)
        p = p * pl.reciprocal(l, approx=not exact)        # EUP slot when approx
        outs.append(jnp.dot(p.astype(compute_dtype), v,
                            preferred_element_type=jnp.float32))
    o_ref[...] = jnp.concatenate(outs, axis=-1)           # merged (T, C)


# ----------------------------------------------------------------------------
# pallas_call wrappers (tiled grids, parallel dimension semantics)
# ----------------------------------------------------------------------------

def pallas_ln_linear(x, g, b, w, bias, *, gelu=False,
                     compute_dtype=jnp.bfloat16):
    M, K = x.shape
    N = w.shape[1]
    tm = _pick_tile(M, (256, 128))
    tn = _pick_tile(N, (256, 128))
    kern = partial(ln_linear_kernel, compute_dtype=compute_dtype, gelu=gelu)
    # TODO(synk): for very large K (e.g. GPT-2-XL 4C), add a K-loop grid axis
    # with an f32 VMEM accumulator instead of a full-K block.
    return pl.pallas_call(
        kern,
        out_shape=jax.ShapeDtypeStruct((M, N), jnp.float32),
        grid=(M // tm, N // tn),
        in_specs=[pl.BlockSpec((tm, K), lambda i, j: (i, 0)),
                  pl.BlockSpec((1, K), lambda i, j: (0, 0)),
                  pl.BlockSpec((1, K), lambda i, j: (0, 0)),
                  pl.BlockSpec((K, tn), lambda i, j: (0, j)),
                  pl.BlockSpec((1, tn), lambda i, j: (0, j))],
        out_specs=pl.BlockSpec((tm, tn), lambda i, j: (i, j)),
        compiler_params=pltpu.CompilerParams(
            dimension_semantics=("parallel", "parallel"),
            vmem_limit_bytes=_VMEM_LIMIT),
    )(x, g.reshape(1, K), b.reshape(1, K), w, bias.reshape(1, N))


def pallas_linear_residual(x, w, bias, res, *, compute_dtype=jnp.bfloat16):
    M, K = x.shape
    N = w.shape[1]
    tm = _pick_tile(M, (256, 128))
    tn = _pick_tile(N, (256, 128))
    kern = partial(linear_residual_kernel, compute_dtype=compute_dtype)
    return pl.pallas_call(
        kern,
        out_shape=jax.ShapeDtypeStruct((M, N), jnp.float32),
        grid=(M // tm, N // tn),
        in_specs=[pl.BlockSpec((tm, K), lambda i, j: (i, 0)),
                  pl.BlockSpec((K, tn), lambda i, j: (0, j)),
                  pl.BlockSpec((1, tn), lambda i, j: (0, j)),
                  pl.BlockSpec((tm, tn), lambda i, j: (i, j))],
        out_specs=pl.BlockSpec((tm, tn), lambda i, j: (i, j)),
        compiler_params=pltpu.CompilerParams(
            dimension_semantics=("parallel", "parallel"),
            vmem_limit_bytes=_VMEM_LIMIT),
    )(x, w, bias.reshape(1, N), res)


def pallas_ln_lm_head(x, g, b, wte, *, compute_dtype=jnp.bfloat16):
    M, C = x.shape
    V = wte.shape[0]
    tm = _pick_tile(M, (256, 128))
    tn = _pick_tile(V, (512, 256, 128))                   # tile the vocab axis
    kern = partial(ln_lm_head_kernel, compute_dtype=compute_dtype)
    return pl.pallas_call(
        kern,
        out_shape=jax.ShapeDtypeStruct((M, V), jnp.float32),
        grid=(M // tm, V // tn),
        in_specs=[pl.BlockSpec((tm, C), lambda i, j: (i, 0)),
                  pl.BlockSpec((1, C), lambda i, j: (0, 0)),
                  pl.BlockSpec((1, C), lambda i, j: (0, 0)),
                  pl.BlockSpec((tn, C), lambda i, j: (j, 0))],   # wte stays (V, C)
        out_specs=pl.BlockSpec((tm, tn), lambda i, j: (i, j)),
        compiler_params=pltpu.CompilerParams(
            dimension_semantics=("parallel", "parallel"),
            vmem_limit_bytes=_VMEM_LIMIT),
    )(x, g.reshape(1, C), b.reshape(1, C), wte)


def pallas_causal_attention(qkv, B, T, n_head, *, compute_dtype=jnp.bfloat16):
    BT, threeC = qkv.shape
    C = threeC // 3
    kern = partial(attention_kernel, n_head=n_head, compute_dtype=compute_dtype)
    return pl.pallas_call(
        kern,
        out_shape=jax.ShapeDtypeStruct((BT, C), jnp.float32),
        grid=(B,),
        in_specs=[pl.BlockSpec((T, threeC), lambda bi: (bi, 0))],
        out_specs=pl.BlockSpec((T, C), lambda bi: (bi, 0)),
        compiler_params=pltpu.CompilerParams(
            dimension_semantics=("parallel",),
            vmem_limit_bytes=_VMEM_LIMIT),
    )(qkv)


# ----------------------------------------------------------------------------
# GPT forward (Pallas-backed)
# ----------------------------------------------------------------------------

def init_params(key, cfg):
    C, V, Tmax, L = cfg["n_embd"], cfg["vocab_size"], cfg["block_size"], cfg["n_layer"]
    keys = jax.random.split(key, 2 + L)
    params = {
        "wte": 0.02 * jax.random.normal(keys[0], (V, C), jnp.float32),
        "wpe": 0.02 * jax.random.normal(keys[1], (Tmax, C), jnp.float32),
        "lnf_g": jnp.ones((C,), jnp.float32),
        "lnf_b": jnp.zeros((C,), jnp.float32),
        "blocks": [],
    }
    for l in range(L):
        k = jax.random.split(keys[2 + l], 4)
        params["blocks"].append(dict(
            ln1_g=jnp.ones((C,), jnp.float32), ln1_b=jnp.zeros((C,), jnp.float32),
            attn_w=0.02 * jax.random.normal(k[0], (C, 3 * C), jnp.float32),
            attn_b=jnp.zeros((3 * C,), jnp.float32),
            proj_w=0.02 * jax.random.normal(k[1], (C, C), jnp.float32),
            proj_b=jnp.zeros((C,), jnp.float32),
            ln2_g=jnp.ones((C,), jnp.float32), ln2_b=jnp.zeros((C,), jnp.float32),
            fc_w=0.02 * jax.random.normal(k[2], (C, 4 * C), jnp.float32),
            fc_b=jnp.zeros((4 * C,), jnp.float32),
            proj2_w=0.02 * jax.random.normal(k[3], (4 * C, C), jnp.float32),
            proj2_b=jnp.zeros((C,), jnp.float32),
        ))
    return params


def gpt_forward(params, idx, cfg, compute_dtype=jnp.bfloat16):
    B, T = idx.shape
    C, H = cfg["n_embd"], cfg["n_head"]

    # TODO(synk): embedding gather left in plain JAX (data-dependent gather).
    tok_emb = jnp.take(params["wte"], idx, axis=0)           # (B, T, C)
    pos_emb = params["wpe"][:T]                              # (T, C)
    x = (tok_emb + pos_emb[None, :, :]).reshape(B * T, C)    # (B*T, C) f32

    for blk in params["blocks"]:
        # --- attention: LN1 fused into QKV matmul, residual fused into proj ---
        qkv = pallas_ln_linear(x, blk["ln1_g"], blk["ln1_b"],
                               blk["attn_w"], blk["attn_b"],
                               compute_dtype=compute_dtype)  # (B*T, 3C)
        y = pallas_causal_attention(qkv, B, T, H,
                                    compute_dtype=compute_dtype)  # (B*T, C)
        x = pallas_linear_residual(y, blk["proj_w"], blk["proj_b"], x,
                                   compute_dtype=compute_dtype)

        # --- MLP: LN2 + fc + GELU fused, residual fused into proj2 ---
        f = pallas_ln_linear(x, blk["ln2_g"], blk["ln2_b"],
                             blk["fc_w"], blk["fc_b"], gelu=True,
                             compute_dtype=compute_dtype)    # (B*T, 4C)
        x = pallas_linear_residual(f, blk["proj2_w"], blk["proj2_b"], x,
                                   compute_dtype=compute_dtype)

    # final LN fused into the (vocab-tiled) lm_head; weight tied to wte, no .T copy
    logits = pallas_ln_lm_head(x, params["lnf_g"], params["lnf_b"],
                               params["wte"], compute_dtype=compute_dtype)
    return logits.reshape(B, T, cfg["vocab_size"])


# ----------------------------------------------------------------------------
# Pure-JAX reference (same math, f32) for correctness checks
# ----------------------------------------------------------------------------

def gpt_forward_ref(params, idx, cfg):
    B, T = idx.shape
    C, H = cfg["n_embd"], cfg["n_head"]
    D = C // H

    def ln(x, g, b):
        m = jnp.mean(x, axis=-1, keepdims=True)
        v = jnp.mean((x - m) ** 2, axis=-1, keepdims=True)
        return (x - m) * lax.rsqrt(v + 1e-5) * g + b

    tok_emb = jnp.take(params["wte"], idx, axis=0)
    x = tok_emb + params["wpe"][:T][None, :, :]              # (B, T, C)

    for blk in params["blocks"]:
        h = ln(x, blk["ln1_g"], blk["ln1_b"])
        qkv = h @ blk["attn_w"] + blk["attn_b"]
        q, k, v = jnp.split(qkv, 3, axis=-1)
        q = q.reshape(B, T, H, D).transpose(0, 2, 1, 3)
        k = k.reshape(B, T, H, D).transpose(0, 2, 1, 3)
        v = v.reshape(B, T, H, D).transpose(0, 2, 1, 3)
        s = jnp.einsum("bhqd,bhkd->bhqk", q, k) / math.sqrt(D)
        mask = jnp.tril(jnp.ones((T, T), bool))
        s = jnp.where(mask[None, None], s, -1e30)
        p = jax.nn.softmax(s, axis=-1)
        y = jnp.einsum("bhqk,bhkd->bhqd", p, v)
        y = y.transpose(0, 2, 1, 3).reshape(B, T, C)
        x = x + (y @ blk["proj_w"] + blk["proj_b"])

        h = ln(x, blk["ln2_g"], blk["ln2_b"])
        f = _gelu_tanh(h @ blk["fc_w"] + blk["fc_b"])
        x = x + (f @ blk["proj2_w"] + blk["proj2_b"])

    x = ln(x, params["lnf_g"], params["lnf_b"])
    return x @ params["wte"].T


# ----------------------------------------------------------------------------
# Main
# ----------------------------------------------------------------------------

if __name__ == "__main__":
    cfg = dict(block_size=8, vocab_size=128, n_layer=2, n_head=2, n_embd=32)
    B, T = 2, 8

    key = jax.random.PRNGKey(0)
    pkey, ikey = jax.random.split(key)
    params = init_params(pkey, cfg)
    idx = jax.random.randint(ikey, (B, T), 0, cfg["vocab_size"], dtype=jnp.int32)

    ref = jax.block_until_ready(gpt_forward_ref(params, idx, cfg))

    # 1) f32 MXU operands: tight structural/numerical check vs the reference.
    logits_f32 = jax.block_until_ready(
        gpt_forward(params, idx, cfg, compute_dtype=jnp.float32))
    assert logits_f32.shape == (B, T, cfg["vocab_size"])
    assert logits_f32.dtype == jnp.float32
    if not jnp.allclose(logits_f32, ref, atol=2e-3, rtol=2e-3):
        raise AssertionError("Pallas GPT (f32) mismatch vs JAX reference")

    # 2) bf16 MXU operands, f32 accumulation (the perf path): looser tolerance.
    logits_bf16 = jax.block_until_ready(
        gpt_forward(params, idx, cfg, compute_dtype=jnp.bfloat16))
    assert logits_bf16.shape == (B, T, cfg["vocab_size"])
    assert logits_bf16.dtype == jnp.float32
    if not jnp.allclose(logits_bf16, ref, atol=3e-2, rtol=3e-2):
        raise AssertionError("Pallas GPT (bf16 MXU) mismatch vs JAX reference")

    print("KERNEL_OK")
</pallas_src>

<mosaic_0001>
module attributes {stable_mosaic.version = 11 : i64} {
  func.func @ln_linear_kernel(%arg0: i32, %arg1: i32, %arg2: memref<16x32xf32, #tpu.memory_space<vmem>>, %arg3: memref<1x32xf32, #tpu.memory_space<vmem>>, %arg4: memref<1x32xf32, #tpu.memory_space<vmem>>, %arg5: memref<32x96xf32, #tpu.memory_space<vmem>>, %arg6: memref<1x96xf32, #tpu.memory_space<vmem>>, %arg7: memref<16x96xf32, #tpu.memory_space<vmem>>) attributes {dimension_semantics = [#tpu.dimension_semantics<parallel>, #tpu.dimension_semantics<parallel>], iteration_bounds = array<i64: 1, 1>, scalar_prefetch = 0 : i64, scratch_operands = 0 : i64, tpu.core_type = #tpu.core_type<tc>, window_params = [{transform_indices = @transform_0, window_bounds = array<i64: 16, 32>}, {pipeline_mode = #tpu.pipeline_mode<synchronous>, transform_indices = @transform_1, window_bounds = array<i64: 1, 32>}, {pipeline_mode = #tpu.pipeline_mode<synchronous>, transform_indices = @transform_2, window_bounds = array<i64: 1, 32>}, {transform_indices = @transform_3, window_bounds = array<i64: 32, 96>}, {transform_indices = @transform_4, window_bounds = array<i64: 1, 96>}, {transform_indices = @transform_5, window_bounds = array<i64: 16, 96>}]} {
    %c0 = arith.constant 0 : index
    %c0_0 = arith.constant 0 : index
    %0 = vector.load %arg2[%c0, %c0_0] : memref<16x32xf32, #tpu.memory_space<vmem>>, vector<16x32xf32>
    %cst = arith.constant dense<0.000000e+00> : vector<16xf32>
    %1 = vector.multi_reduction <add>, %0, %cst [1] : vector<16x32xf32> to vector<16xf32>
    %2 = vector.shape_cast %1 : vector<16xf32> to vector<16x1xf32>
    %cst_1 = arith.constant 3.200000e+01 : f32
    %3 = vector.broadcast %cst_1 : f32 to vector<16x1xf32>
    %4 = arith.divf %2, %3 : vector<16x1xf32>
    %5 = vector.broadcast %4 : vector<16x1xf32> to vector<16x32xf32>
    %6 = arith.subf %0, %5 : vector<16x32xf32>
    %7 = arith.mulf %6, %6 : vector<16x32xf32>
    %cst_2 = arith.constant dense<0.000000e+00> : vector<16xf32>
    %8 = vector.multi_reduction <add>, %7, %cst_2 [1] : vector<16x32xf32> to vector<16xf32>
    %9 = vector.shape_cast %8 : vector<16xf32> to vector<16x1xf32>
    %cst_3 = arith.constant 3.200000e+01 : f32
    %10 = vector.broadcast %cst_3 : f32 to vector<16x1xf32>
    %11 = arith.divf %9, %10 : vector<16x1xf32>
    %12 = vector.broadcast %4 : vector<16x1xf32> to vector<16x32xf32>
    %13 = arith.subf %0, %12 : vector<16x32xf32>
    %cst_4 = arith.constant 9.99999974E-6 : f32
    %14 = vector.broadcast %cst_4 : f32 to vector<16x1xf32>
    %15 = arith.addf %11, %14 : vector<16x1xf32>
    %16 = math.rsqrt %15 : vector<16x1xf32>
    %17 = vector.broadcast %16 : vector<16x1xf32> to vector<16x32xf32>
    %18 = arith.mulf %13, %17 : vector<16x32xf32>
    %c0_5 = arith.constant 0 : index
    %c0_6 = arith.constant 0 : index
    %19 = vector.load %arg3[%c0_5, %c0_6] : memref<1x32xf32, #tpu.memory_space<vmem>>, vector<1x32xf32>
    %20 = vector.broadcast %19 : vector<1x32xf32> to vector<16x32xf32>
    %21 = arith.mulf %18, %20 : vector<16x32xf32>
    %c0_7 = arith.constant 0 : index
    %c0_8 = arith.constant 0 : index
    %22 = vector.load %arg4[%c0_7, %c0_8] : memref<1x32xf32, #tpu.memory_space<vmem>>, vector<1x32xf32>
    %23 = vector.broadcast %22 : vector<1x32xf32> to vector<16x32xf32>
    %24 = arith.addf %21, %23 : vector<16x32xf32>
    %c0_9 = arith.constant 0 : index
    %c0_10 = arith.constant 0 : index
    %25 = vector.load %arg5[%c0_9, %c0_10] : memref<32x96xf32, #tpu.memory_space<vmem>>, vector<32x96xf32>
    %cst_11 = arith.constant dense<0.000000e+00> : vector<16x96xf32>
    %26 = tpu.matmul %24, %25, %cst_11 {dimension_numbers = #tpu.dot_dimension_numbers<[1], [0], [0], [1], [0, 0, 1, 1], [], []>} : vector<16x32xf32>, vector<32x96xf32>, vector<16x96xf32> -> vector<16x96xf32>
    %c0_12 = arith.constant 0 : index
    %c0_13 = arith.constant 0 : index
    %27 = vector.load %arg6[%c0_12, %c0_13] : memref<1x96xf32, #tpu.memory_space<vmem>>, vector<1x96xf32>
    %28 = vector.broadcast %27 : vector<1x96xf32> to vector<16x96xf32>
    %29 = arith.addf %26, %28 : vector<16x96xf32>
    %c0_14 = arith.constant 0 : index
    %c0_15 = arith.constant 0 : index
    %30 = vector.load %arg7[%c0_14, %c0_15] : memref<16x96xf32, #tpu.memory_space<vmem>>, vector<16x96xf32>
    tpu.vector_store %arg7[%c0_14, %c0_15], %29 {strides = array<i32>} : memref<16x96xf32, #tpu.memory_space<vmem>>, vector<16x96xf32>,
    return
  }
  func.func @transform_0(%arg0: i32, %arg1: i32) -> (i32, i32) {
    %c0_i32 = arith.constant 0 : i32
    %c0_i32_0 = arith.constant 0 : i32
    return %arg0, %c0_i32 : i32, i32
  }
  func.func @transform_1(%arg0: i32, %arg1: i32) -> (i32, i32) {
    %c0_i32 = arith.constant 0 : i32
    %c0_i32_0 = arith.constant 0 : i32
    %c0_i32_1 = arith.constant 0 : i32
    return %c0_i32, %c0_i32_0 : i32, i32
  }
  func.func @transform_2(%arg0: i32, %arg1: i32) -> (i32, i32) {
    %c0_i32 = arith.constant 0 : i32
    %c0_i32_0 = arith.constant 0 : i32
    %c0_i32_1 = arith.constant 0 : i32
    return %c0_i32, %c0_i32_0 : i32, i32
  }
  func.func @transform_3(%arg0: i32, %arg1: i32) -> (i32, i32) {
    %c0_i32 = arith.constant 0 : i32
    %c0_i32_0 = arith.constant 0 : i32
    return %c0_i32, %arg1 : i32, i32
  }
  func.func @transform_4(%arg0: i32, %arg1: i32) -> (i32, i32) {
    %c0_i32 = arith.constant 0 : i32
    %c0_i32_0 = arith.constant 0 : i32
    return %c0_i32, %arg1 : i32, i32
  }
  func.func @transform_5(%arg0: i32, %arg1: i32) -> (i32, i32) {
    %c0_i32 = arith.constant 0 : i32
    return %arg0, %arg1 : i32, i32
  }
}

</mosaic_0001>

<bundles_post_ra>
// kernel: tpu_custom_call.1
= control target key start
LH: loop header
LB: loop body
LE: loop exit
PB: predicated region body
PF: predicated region fallthrough
CT: control target
= control target key end

     0   :  { %10 = vsyncpa [#allocation3], 0  ;;  %s416_s0 = inlined_call_operand.hbm [shape: f32[16,32], index: 0, kind: input, shape index: {}]   ;;  %s417_s1 = inlined_call_operand.vmem [shape: f32[1,32], index: 1, kind: input, shape index: {}]   ;;  %s418_s2 = inlined_call_operand.vmem [shape: f32[1,32], index: 2, kind: input, shape index: {}]   ;;  %s419_s3 = inlined_call_operand.hbm [shape: f32[32,96], index: 3, kind: input, shape index: {}]   ;;  %s420_s4 = inlined_call_operand.vmem [shape: f32[1,96], index: 4, kind: input, shape index: {}]   ;;  %s421_s5 = inlined_call_operand.hbm [shape: f32[16,96], index: 5, kind: output, shape index: {}]  }
   0x1   :  { %11 = vsyncpa [#allocation6], 0 }
   0x2   :  { %12 = vsyncpa [#allocation4], 0  ;;  %s321_s18 = smov [#allocation2]   ;;  %s249_s22 = scalar_lea.hbm %s416_s0, 256 }
   0x3   :  { %s18_s19 = sshll.u32 %s321_s18, 4  ;;  %p250_p0 = scmp.ne.s32.totalorder %s416_s0, %s249_s22  ;;  %s19_s19 = int_to_ptr.vmem [resolvable:$true] %s18_s19 }
   0x4   :  { %p253_p1 = scmp.lt.u32.totalorder %s249_s22, %s416_s0 }
   0x6   :  { %p255_p2 = pnand %p253_p1, %p250_p0 }
   0x8   :  { %258 = shalt.err (!%p255_p2)
}
   0x9   :  { %s259_s27 = scalar_lea.vmem %s19_s19, 256  ;;  %p264_p4 = scmp.lt.s32.totalorder %s19_s19, %s19_s19 }
   0xa   :  { %p260_p3 = scmp.ne.s32.totalorder %s19_s19, %s259_s27  ;;  %p265_p5 = scmp.lt.s32.totalorder %s259_s27, %s259_s27 }
   0xc   :  { %p266_p6 = por %p265_p5, %p264_p4 }
   0xe   :  { %p267_p7 = pnand %p266_p6, %p260_p3 }
  0x10   :  { %270 = shalt.err (!%p267_p7)
}
  0x11   :  { %s322_s28 = smov 128   ;;  %s323_s29 = smov 8  }
  0x12   :  { %24 = dma.hbm_to_vmem [thread:$0]  %s416_s0, 256, %s19_s19, [#allocation3], %s322_s28, %s322_s28, %s323_s29  }
  0x13   :  { %s324_s7 = smov [#allocation5]   ;;  %s271_s11 = scalar_lea.hbm %s419_s3, 512 }
  0x14   :  { %s34_s8 = sshll.u32 %s324_s7, 4  ;;  %p272_p8 = scmp.ne.s32.totalorder %s419_s3, %s271_s11  ;;  %s35_s8 = int_to_ptr.vmem [resolvable:$true] %s34_s8 }
  0x15   :  { %p275_p9 = scmp.lt.u32.totalorder %s271_s11, %s419_s3 }
  0x17   :  { %p277_p10 = pnand %p275_p9, %p272_p8 }
  0x19   :  { %280 = shalt.err (!%p277_p10)
}
  0x1a   :  { %s281_s16 = scalar_lea.vmem %s35_s8, 512  ;;  %p286_p12 = scmp.lt.s32.totalorder %s35_s8, %s35_s8 }
  0x1b   :  { %p282_p11 = scmp.ne.s32.totalorder %s35_s8, %s281_s16  ;;  %p287_p13 = scmp.lt.s32.totalorder %s281_s16, %s281_s16 }
  0x1d   :  { %p288_p0 = por %p287_p13, %p286_p12 }
  0x1f   :  { %p289_p1 = pnand %p288_p0, %p282_p11 }
  0x21   :  { %292 = shalt.err (!%p289_p1)
}
  0x22   :  { %40 = dma.hbm_to_vmem [thread:$0]  %s419_s3, 512, %s35_s8, [#allocation6], %s322_s28, %s322_s28, %s323_s29  }
  0x23   :  { %315 = dma.done.wait [#allocation3], 256  }
  0x24   :  { %316 = vsyncadd [#allocation3], 4294967040 }
  0x25   :  { %317 = dma.done.wait [#allocation6], 512  }
  0x26   :  { %318 = vsyncadd [#allocation6], 4294966784  ;;  %vm51_vm0 = vcmask 261120   ;;  %v49_v0 = vld [vmem:[#allocation2] sm:$0xff]  ;;  %v50_v1 = vld [vmem:[#allocation2 + $0x8] sm:$0xff]  ;;  %vm189_vm1 = vcmask 785408  }
  0x27   :  { %v52_v2 = vsel %vm51_vm0, %v49_v0, 0.0  ;;  %v55_v3 = vsel %vm51_vm0, %v50_v1, 0.0  ;;  %v97_v14 = vld [vmem:[#allocation5] sm:$0xff]  ;;  %v98_v15 = vld [vmem:[#allocation5 + $0x8] sm:$0xff]  ;;  %v99_v16 = vld [vmem:[#allocation5 + $0x10] sm:$0xff] }
  0x28   :  { %53 = vadd.xlane.f32.xlu0 %v52_v2  ;;  %v232_v17 = vpack.c.bf16 %v98_v15, %v97_v14  ;;  %v100_v18 = vld [vmem:[#allocation5 + $0x18] sm:$0xff]  ;;  %v210_v27 = vld [vmem:[%s417_s1] ss:$0 sm:$0xff]  ;;  %s325_s1 = smov [#allocation7]  }
  0x29   :  { %v236_v19 = vpack.c.bf16 %v100_v18, %v99_v16  ;;  %v211_v29 = vld [vmem:[%s418_s2] ss:$0 sm:$0xff]  ;;  %s197_s23 = sshll.u32 %s325_s1, 4  ;;  %s198_s23 = int_to_ptr.vmem [resolvable:$true] %s197_s23 }
  0x2a   :  { %233 = vmatprep.subr.bf16.mxu0 %v232_v17  ;;  %v212_v36 = vld [vmem:[%s420_s4] ss:$0 sm:$0xff]  ;;  %s293_s2 = scalar_lea.vmem %s198_s23, 256  ;;  %p298_p3 = scmp.lt.s32.totalorder %s198_s23, %s198_s23 }
  0x2b   :  { %235 = vmatpush3.bf16.msra.mxu0 %v232_v17  ;;  %p294_p2 = scmp.ne.s32.totalorder %s198_s23, %s293_s2  ;;  %p299_p4 = scmp.lt.s32.totalorder %s293_s2, %s293_s2 }
  0x2c   :  { %56 = vadd.xlane.f32.xlu0 %v55_v3  ;;  %237 = vmatprep.subr.bf16.mxu0 %v236_v19 }
  0x2d   :  { %p300_p5 = por %p299_p4, %p298_p3 }
  0x2f   :  { %239 = vmatpush3.bf16.msra.mxu0 %v236_v19  ;;  %p301_p6 = pnand %p300_p5, %p294_p2 }
  0xb5   :  { %v54_v4 = vpop.xlane.xlu0 %53 }
  0xb6   :  { %v59_v5 = vmul.f32 0.03125, %v54_v4 }
  0xb8   :  { %v61_v6 = vsub.f32 %v49_v0, %v59_v5 }
  0xb9   :  { %v57_v7 = vpop.xlane.xlu0 %56 }
  0xba   :  { %v60_v8 = vmul.f32 0.03125, %v57_v7  ;;  %v63_v9 = vmul.f32 %v61_v6, %v61_v6 }
  0xbc   :  { %v62_v10 = vsub.f32 %v50_v1, %v60_v8  ;;  %v65_v11 = vsel %vm51_vm0, %v63_v9, 0.0 }
  0xbd   :  { %66 = vadd.xlane.f32.xlu1 %v65_v11 }
  0xbe   :  { %v64_v12 = vmul.f32 %v62_v10, %v62_v10 }
  0xc0   :  { %v68_v13 = vsel %vm51_vm0, %v64_v12, 0.0 }
  0xc1   :  { %69 = vadd.xlane.f32.xlu1 %v68_v13 }
 0x14a   :  { %v67_v20 = vpop.xlane.xlu1 %66 }
 0x14b   :  { %v71_v21 = vmul.f32 0.03125, %v67_v20 }
 0x14d   :  { %v73_v22 = vadd.f32 1e-05, %v71_v21 }
 0x14e   :  { %v70_v23 = vpop.xlane.xlu1 %69 }
 0x14f   :  { %245 = vrsqrt.f32 %v73_v22  ;;  %v72_v24 = vmul.f32 0.03125, %v70_v23 }
 0x151   :  { %v74_v25 = vadd.f32 1e-05, %v72_v24 }
 0x153   :  { %247 = vrsqrt.f32 %v74_v25 }
 0x159   :  { %v246_v26 = vpop.eup %245 }
 0x15a   :  { %v77_v28 = vmul.f32 %v246_v26, %v61_v6 }
 0x15c   :  { %v86_v30 = vmul.f32 %v210_v27, %v77_v28 }
 0x15d   :  { %v248_v31 = vpop.eup %247 }
 0x15e   :  { %v78_v32 = vmul.f32 %v248_v31, %v62_v10  ;;  %v95_v33 = vadd.f32 %v211_v29, %v86_v30 }
 0x160   :  { %v87_v34 = vmul.f32 %v210_v27, %v78_v32  ;;  %229 = vmatprep.mubr.msk.f32.mxu0 %vm51_vm0, %v95_v33 }
 0x162   :  { %v96_v35 = vadd.f32 %v211_v29, %v87_v34 }
 0x164   :  { %230 = vmatmul.mubr.msk.f32.vlgmr.msra.gmra.mrb[0].mxu0 %vm51_vm0, %v96_v35 }
 0x237   :  { %v231_v37 = vpop.f32.mrb[0].mxu0 }
 0x238   :  { %v186_v38 = vadd.f32 %v231_v37, %v212_v36  ;;  %v180_v39 = vpop.f32.mrb[1].mxu0 }
 0x239   :  { %v181_v40 = vadd.f32 %v212_v36, %v180_v39 }
 0x23a   :  { %191 = vst.msk [vmem:[#allocation7 + $0x8] sm:$0xff] %vm189_vm1, %v186_v38 }
 0x23b   :  { %190 = vst.msk [vmem:[#allocation7] sm:$0xff] %vm189_vm1, %v181_v40 }
 0x23c   :  { %304 = shalt.err (!%p301_p6)
}
 0x23d   :  { %s305_s4 = scalar_lea.hbm %s421_s5, 256 }
 0x23e   :  { %p306_p7 = scmp.ne.s32.totalorder %s421_s5, %s305_s4  ;;  %p309_p8 = scmp.lt.u32.totalorder %s305_s4, %s421_s5 }
 0x240   :  { %p311_p9 = pnand %p309_p8, %p306_p7 }
 0x242   :  { %314 = shalt.err (!%p311_p9)
}
 0x243   :  { %203 = dma.vmem_to_hbm [thread:$0]  %s198_s23, 256, %s421_s5, [#allocation4], %s322_s28, %s322_s28, %s323_s29  }
 0x244   :  { %319 = dma.done.wait [#allocation4], 256  }
 0x245   :  { %320 = vsyncadd [#allocation4], 4294967040 }
 0x246   :  { %207 = vsyncpa [#allocation3], 1 }
 0x247   :  { %208 = vsyncpa [#allocation6], 1 }
 0x248   :  { %209 = vsyncpa [#allocation4], 1 }

</bundles_post_ra>
